<compile_context>
chip_gen: v7x
topology: tpu7x:2x2x1
jax: 0.10.0
libtpu: 0.0.40
codegen_flags: <defaults>
</compile_context>

<pallas_src>
import jax
import jax.numpy as jnp
from jax import lax
from jax.experimental import pallas as pl
from jax.experimental.pallas import tpu as pltpu


def lsh_kernel(xe_ref, w_ref, out_ref):
    # xe_ref:  (1, K)        bf16 VMEM -- row 0 of x, repeated per attribute
    # w_ref:   (K, out_dim)  bf16 VMEM -- weight slab, natural MXU (K, N) layout
    # out_ref: (1, out_dim)  f32  VMEM -- single lane-oriented store
    out_ref[...] = lax.dot_general(
        xe_ref[...],
        w_ref[...],
        dimension_numbers=(((1,), (0,)), ((), ())),  # standard (M,K)x(K,N)
        preferred_element_type=jnp.float32,
    )


def lsh_forward(x, weights):
    """Pallas implementation of LSH.forward. Returns (out_dim,) float32.

    Note: like the torch module, only row 0 of x contributes to the output.
    """
    out_dim, num_samples, num_attributes = weights.shape
    k = num_samples * num_attributes

    # Parameter-layout plumbing (done once at init in a real deployment):
    #   w2[s*na + j, i] = weights[i, s, j]   -- (K, out_dim), bf16
    w2 = jnp.transpose(weights.reshape(out_dim, k)).astype(jnp.bfloat16)
    # Input plumbing: xe[0, s*na + j] = x[0, s]  (tiny at K=512; for huge K,
    # expand in-kernel or pre-reduce the weights over the attribute axis).
    xe = jnp.repeat(x[0].astype(jnp.bfloat16), num_attributes)[None, :]

    out = pl.pallas_call(
        lsh_kernel,
        out_shape=jax.ShapeDtypeStruct((1, out_dim), jnp.float32),
        in_specs=[
            pl.BlockSpec(memory_space=pltpu.MemorySpace.VMEM),
            pl.BlockSpec(memory_space=pltpu.MemorySpace.VMEM),
        ],
        out_specs=pl.BlockSpec(memory_space=pltpu.MemorySpace.VMEM),
        cost_estimate=pl.CostEstimate(
            flops=2 * out_dim * k,
            transcendentals=0,
            # bf16 inputs (2 B/elem), f32 output.
            bytes_accessed=(out_dim * k + k) * 2 + out_dim * 4,
        ),
    )(xe, w2)
    return out[0]


if __name__ == "__main__":
    # Small synthetic shapes consistent with the module.
    num_attributes = 16
    num_samples = 32
    out_dim = 8
    batch = 2

    key = jax.random.PRNGKey(0)
    kx, kw = jax.random.split(key)

    # Deterministic "torch.randn(...) * 0.15" style weights.
    weights = (
        jax.random.normal(kw, (out_dim, num_samples, num_attributes), jnp.float32)
        * 0.15
    )
    # Input x: (batch, num_samples) so that matmul(x, weights[i]) is valid.
    x = jax.random.normal(kx, (batch, num_samples), jnp.float32)

    out = jax.block_until_ready(lsh_forward(x, weights))
    assert out.shape == (out_dim,)
    assert out.dtype == jnp.float32

    # (1) Tight check against a reference using the same bf16-rounded operands
    #     with f32 accumulation (validates the kernel itself).
    w_bf = weights.astype(jnp.bfloat16).astype(jnp.float32)
    x_bf = x.astype(jnp.bfloat16).astype(jnp.float32)
    ref_bf = jnp.stack(
        [jnp.sum(jnp.matmul(x_bf, w_bf[i])[0]) for i in range(out_dim)]
    )
    assert jnp.allclose(out, ref_bf, atol=1e-2, rtol=1e-2), (out, ref_bf)

    # (2) Loose check against the full-precision (torch-semantics) reference:
    #     only bf16 quantization error separates the two.
    ref_f32 = jnp.stack(
        [jnp.sum(jnp.matmul(x, weights[i])[0]) for i in range(out_dim)]
    )
    assert jnp.allclose(out, ref_f32, atol=1e-1, rtol=5e-2), (out, ref_f32)

    print("KERNEL_OK")
</pallas_src>

<mosaic_0001>
module attributes {stable_mosaic.version = 11 : i64} {
  func.func @lsh_kernel(%arg0: memref<1x512xbf16, #tpu.memory_space<vmem>>, %arg1: memref<512x8xbf16, #tpu.memory_space<vmem>>, %arg2: memref<1x8xf32, #tpu.memory_space<vmem>>) attributes {dimension_semantics = [], scalar_prefetch = 0 : i64, scratch_operands = 0 : i64, tpu.core_type = #tpu.core_type<tc>} {
    %c0 = arith.constant 0 : index
    %c0_0 = arith.constant 0 : index
    %0 = vector.load %arg0[%c0, %c0_0] : memref<1x512xbf16, #tpu.memory_space<vmem>>, vector<1x512xbf16>
    %c0_1 = arith.constant 0 : index
    %c0_2 = arith.constant 0 : index
    %1 = vector.load %arg1[%c0_1, %c0_2] : memref<512x8xbf16, #tpu.memory_space<vmem>>, vector<512x8xbf16>
    %cst = arith.constant dense<0.000000e+00> : vector<1x8xf32>
    %2 = tpu.matmul %0, %1, %cst {dimension_numbers = #tpu.dot_dimension_numbers<[1], [0], [0], [1], [0, 0, 1, 1], [], []>} : vector<1x512xbf16>, vector<512x8xbf16>, vector<1x8xf32> -> vector<1x8xf32>
    %c0_3 = arith.constant 0 : index
    %c0_4 = arith.constant 0 : index
    %3 = vector.load %arg2[%c0_3, %c0_4] : memref<1x8xf32, #tpu.memory_space<vmem>>, vector<1x8xf32>
    tpu.vector_store %arg2[%c0_3, %c0_4], %2 {strides = array<i32>} : memref<1x8xf32, #tpu.memory_space<vmem>>, vector<1x8xf32>,
    return
  }
}

</mosaic_0001>

<bundles_post_ra>
// kernel: tpu_custom_call.1
= control target key start
LH: loop header
LB: loop body
LE: loop exit
PB: predicated region body
PF: predicated region fallthrough
CT: control target
= control target key end

     0   :  { %v90_v30 = vlaneseq  ;;  %v530_v34 = vmov 1966171168   ;;  %s658_s0 = inlined_call_operand.vmem [shape: bf16[1,512], index: 0, kind: input, shape index: {}]   ;;  %s659_s1 = inlined_call_operand.vmem [shape: bf16[512,8], index: 1, kind: input, shape index: {}]   ;;  %s660_s2 = inlined_call_operand.hbm [shape: f32[1,8], index: 2, kind: output, shape index: {}]  }
   0x1   :  { %v474_v0 = vld [vmem:[%s659_s1 + $0x40] sm:$0xff]   ;;  %v478_v4 = vld [vmem:[%s659_s1 + $0x48] sm:$0xff]   ;;  %v482_v8 = vld [vmem:[%s659_s1 + $0x50] sm:$0xff]   ;;  %v88_v35 = vunpack.c.l.s4 %v530_v34 }
   0x2   :  { %v475_v1 = vld [vmem:[%s659_s1 + $0xc0] sm:$0xff]   ;;  %428 = vmatprep.subr.bf16.mxu0 %v474_v0  ;;  %v479_v5 = vld [vmem:[%s659_s1 + $0xc8] sm:$0xff]   ;;  %v483_v9 = vld [vmem:[%s659_s1 + $0xd0] sm:$0xff]   ;;  %v91_v36 = vshrl.u32 %v90_v30, 7 }
   0x3   :  { %v476_v2 = vld [vmem:[%s659_s1] sm:$0xff]   ;;  %450 = vmatprep.subr.bf16.mxu1 %v475_v1  ;;  %v480_v6 = vld [vmem:[%s659_s1 + $0x8] sm:$0xff]   ;;  %v484_v10 = vld [vmem:[%s659_s1 + $0x10] sm:$0xff]  }
   0x4   :  { %v477_v3 = vld [vmem:[%s659_s1 + $0x80] sm:$0xff]   ;;  %429 = vmatpush3.bf16.msra.mxu0 %v476_v2  ;;  %v481_v7 = vld [vmem:[%s659_s1 + $0x88] sm:$0xff]   ;;  %v485_v11 = vld [vmem:[%s659_s1 + $0x90] sm:$0xff]  }
   0x5   :  { %451 = vmatpush3.bf16.msra.mxu1 %v477_v3  ;;  %430 = vmatprep.subr.bf16.mxu0 %v478_v4  ;;  %v486_v12 = vld [vmem:[%s659_s1 + $0x58] sm:$0xff]   ;;  %v490_v16 = vld [vmem:[%s659_s1 + $0x60] sm:$0xff]   ;;  %v494_v20 = vld [vmem:[%s659_s1 + $0x68] sm:$0xff]  }
   0x6   :  { %452 = vmatprep.subr.bf16.mxu1 %v479_v5  ;;  %v487_v13 = vld [vmem:[%s659_s1 + $0xd8] sm:$0xff]   ;;  %v491_v17 = vld [vmem:[%s659_s1 + $0xe0] sm:$0xff]   ;;  %v495_v21 = vld [vmem:[%s659_s1 + $0xe8] sm:$0xff]  }
   0x7   :  { %v488_v14 = vld [vmem:[%s659_s1 + $0x18] sm:$0xff]   ;;  %v492_v18 = vld [vmem:[%s659_s1 + $0x20] sm:$0xff]   ;;  %v496_v22 = vld [vmem:[%s659_s1 + $0x28] sm:$0xff]  }
   0x8   :  { %431 = vmatpush3.bf16.msra.mxu0 %v480_v6  ;;  %v489_v15 = vld [vmem:[%s659_s1 + $0x98] sm:$0xff]   ;;  %v493_v19 = vld [vmem:[%s659_s1 + $0xa0] sm:$0xff]   ;;  %v497_v23 = vld [vmem:[%s659_s1 + $0xa8] sm:$0xff]  }
   0x9   :  { %453 = vmatpush3.bf16.msra.mxu1 %v481_v7  ;;  %432 = vmatprep.subr.bf16.mxu0 %v482_v8  ;;  %v498_v24 = vld [vmem:[%s659_s1 + $0x70] sm:$0xff]   ;;  %v502_v28 = vld [vmem:[%s659_s1 + $0x78] sm:$0xff]   ;;  %v395_v33 = vld.sshfl [vmem:[%s658_s0] sm:$0x33 pattern:$0x75316420] }
   0xa   :  { %454 = vmatprep.subr.bf16.mxu1 %v483_v9  ;;  %v499_v25 = vld [vmem:[%s659_s1 + $0xf0] sm:$0xff]   ;;  %v503_v29 = vld [vmem:[%s659_s1 + $0xf8] sm:$0xff]  }
   0xb   :  { %v500_v26 = vld [vmem:[%s659_s1 + $0x30] sm:$0xff]   ;;  %v504_v31 = vld [vmem:[%s659_s1 + $0x38] sm:$0xff]  }
   0xc   :  { %433 = vmatpush3.bf16.msra.mxu0 %v484_v10  ;;  %v501_v27 = vld [vmem:[%s659_s1 + $0xb0] sm:$0xff]   ;;  %v505_v32 = vld [vmem:[%s659_s1 + $0xb8] sm:$0xff]  }
   0xd   :  { %455 = vmatpush3.bf16.msra.mxu1 %v485_v11  ;;  %434 = vmatprep.subr.bf16.mxu0 %v486_v12 }
   0xe   :  { %456 = vmatprep.subr.bf16.mxu1 %v487_v13 }
  0x10   :  { %435 = vmatpush3.bf16.msra.mxu0 %v488_v14 }
  0x11   :  { %457 = vmatpush3.bf16.msra.mxu1 %v489_v15  ;;  %436 = vmatprep.subr.bf16.mxu0 %v490_v16 }
  0x12   :  { %458 = vmatprep.subr.bf16.mxu1 %v491_v17 }
  0x14   :  { %437 = vmatpush3.bf16.msra.mxu0 %v492_v18 }
  0x15   :  { %459 = vmatpush3.bf16.msra.mxu1 %v493_v19  ;;  %438 = vmatprep.subr.bf16.mxu0 %v494_v20 }
  0x16   :  { %460 = vmatprep.subr.bf16.mxu1 %v495_v21 }
  0x18   :  { %439 = vmatpush3.bf16.msra.mxu0 %v496_v22 }
  0x19   :  { %461 = vmatpush3.bf16.msra.mxu1 %v497_v23  ;;  %440 = vmatprep.subr.bf16.mxu0 %v498_v24 }
  0x1a   :  { %462 = vmatprep.subr.bf16.mxu1 %v499_v25 }
  0x1c   :  { %441 = vmatpush3.bf16.msra.mxu0 %v500_v26 }
  0x1d   :  { %463 = vmatpush3.bf16.msra.mxu1 %v501_v27  ;;  %442 = vmatprep.subr.bf16.mxu0 %v502_v28 }
  0x1e   :  { %464 = vmatprep.subr.bf16.mxu1 %v503_v29 }
  0x20   :  { %443 = vmatpush3.bf16.msra.mxu0 %v504_v31 }
  0x21   :  { %465 = vmatpush3.bf16.msra.mxu1 %v505_v32 }
  0x22   :  { %7 = vsyncpa [#allocation3], 0  ;;  %v86_v37 = vcombine.high %v395_v33, %v395_v33  ;;  %v89_v38 = vunpack.c.0.s8 %v88_v35  ;;  %s531_s0 = smov [#allocation2]   ;;  %vm379_vm0 = vcmask 57344  }
  0x23   :  { %s387_s1 = sshll.u32 %s531_s0, 4  ;;  %s388_s1 = int_to_ptr.vmem [resolvable:$true] %s387_s1 }
  0x24   :  { %v92_v39 = vsub.s32 %v89_v38, %v91_v36  ;;  %s506_s19 = scalar_lea.vmem %s388_s1, 16  ;;  %s510_s20 = scalar_lea.vmem %s388_s1, 32 }
  0x25   :  { %p507_p0 = scmp.ne.s32.totalorder %s388_s1, %s506_s19  ;;  %p511_p1 = scmp.lt.s32.totalorder %s388_s1, %s388_s1 }
  0x26   :  { %v100_v40 = vrot.slane %v86_v37, %v92_v39  ;;  %v93_v41 = vrot.slane %v395_v33, %v92_v39  ;;  %p512_p2 = scmp.lt.s32.totalorder %s510_s20, %s506_s19 }
  0x28   :  { %331 = vmatprep.mubr.bf16.mxu0 %v100_v40  ;;  %v102_v42 = vcombine.high %v100_v40, %v100_v40  ;;  %v101_v43 = vcombine.high %v93_v41, %v93_v41  ;;  %p513_p3 = por %p512_p2, %p511_p1 }
  0x29   :  { %332 = vmatmul.mubr.bf16.vlgmr.msra.gmra.mrb[0].mxu0 %v93_v41 }
  0x2a   :  { %371 = vmatprep.mubr.bf16.mxu1 %v102_v42  ;;  %p514_p4 = pnand %p513_p3, %p507_p0 }
  0x2b   :  { %372 = vmatmul.mubr.bf16.vlgmr.msra.gmra.mrb[0].mxu1 %v101_v43 }
  0xfc   :  { %v444_v44 = vpop.f32.mrb[0].mxu0 }
  0xfd   :  { %v445_v45 = vpop.f32.mrb[1].mxu0 }
  0xfe   :  { %v466_v46 = vpop.f32.mrb[0].mxu1  ;;  %v446_v47 = vadd.f32 %v445_v45, %v444_v44  ;;  %v447_v48 = vpop.f32.mrb[2].mxu0 }
  0xff   :  { %v467_v49 = vpop.f32.mrb[1].mxu1  ;;  %v448_v50 = vpop.f32.mrb[3].mxu0 }
 0x100   :  { %v468_v51 = vadd.f32 %v467_v49, %v466_v46  ;;  %v469_v52 = vpop.f32.mrb[2].mxu1 }
 0x101   :  { %v470_v53 = vpop.f32.mrb[3].mxu1 }
 0x102   :  { %v374_v54 = vadd.f32 %v468_v51, %v446_v47 }
 0x104   :  { %380 = vst.msk [vmem:[#allocation2] sm:$0x1] %vm379_vm0, %v374_v54 }
 0x105   :  { %517 = shalt.err (!%p514_p4)
}
 0x106   :  { %s518_s23 = scalar_lea.hbm %s660_s2, 16 }
 0x107   :  { %p519_p5 = scmp.ne.s32.totalorder %s660_s2, %s518_s23  ;;  %p522_p6 = scmp.lt.u32.totalorder %s518_s23, %s660_s2 }
 0x109   :  { %p524_p7 = pnand %p522_p6, %p519_p5 }
 0x10b   :  { %527 = shalt.err (!%p524_p7)
}
 0x10c   :  { %390 = dma.vmem_to_hbm [thread:$0]  %s388_s1, 16, %s660_s2, [#allocation3]  }
 0x10d   :  { %528 = dma.done.wait [#allocation3], 16  }
 0x10e   :  { %529 = vsyncadd [#allocation3], 4294967280 }
 0x10f   :  { %394 = vsyncpa [#allocation3], 1 }

</bundles_post_ra>
